<compile_context>
chip_gen: v6e
topology: v6e:2x2x1
jax: 0.10.0
libtpu: 0.0.40
codegen_flags: <defaults>
</compile_context>

<pallas_src>
import numpy as np
import jax
import jax.numpy as jnp
from jax import lax
from jax.experimental import pallas as pl
from jax.experimental.pallas import tpu as pltpu


def _make_fused_kernel(G, S, Tp, L, D, P):
    """Fused: gather (one-hot MXU) -> TimeDistributed(att_proj) -> att_scorer -> masked softmax
    -> weighted token sum -> ClassificationHead, for G batch items per grid step."""
    GS = G * S          # sentences handled per grid step
    R = GS * Tp         # token rows handled per grid step
    GL = G * L          # rows in the resident bert slab

    def kernel(idx_ref,    # VMEM (1, R, 1) int32   slab-local gather indices
               mask_ref,   # VMEM (G, S, Tp) f32    token mask
               slab_ref,   # VMEM (G, L, D) bf16    bert hidden states (auto-pipelined)
               wp_ref,     # VMEM (D, D) bf16       TimeDistributed(att_proj) weight
               bp_ref,     # VMEM (1, D) f32
               ws_ref,     # VMEM (1, D) f32        att_scorer weight (as a row)
               bs_ref,     # SMEM (1, 1) f32        att_scorer bias (scalar)
               wd_ref,     # VMEM (D, D) bf16       head dense weight
               bd_ref,     # VMEM (1, D) f32
               wo_ref,     # VMEM (D, P) bf16       head out_proj weight (lane-padded)
               bo_ref,     # VMEM (1, P) f32
               reps_ref,   # OUT  (G, S, D) f32
               logits_ref  # OUT  (G, S, P) f32
               ):
        # ---- fused gather: exact one-hot row-select on the MXU (no per-row DMAs) ----
        ids = idx_ref[0]                                            # (R, 1) int32
        onehot = (ids == lax.broadcasted_iota(jnp.int32, (R, GL), 1)
                  ).astype(jnp.bfloat16)                            # (R, GL)
        slab = slab_ref[...].reshape(GL, D)                         # (GL, D) bf16
        x2b = jnp.dot(onehot, slab,
                      preferred_element_type=jnp.float32).astype(jnp.bfloat16)   # (R, D)

        # ---- TimeDistributed(att_proj): flatten leading dims -> (R, D) @ (D, D) on MXU ----
        proj = jnp.tanh(
            jnp.dot(x2b, wp_ref[...], preferred_element_type=jnp.float32)
            + bp_ref[...])                                          # (R, D) f32

        # ---- TimeDistributed(att_scorer) D->1: VPU multiply + lane reduce (MXU-free) ----
        raw = (jnp.sum(proj.reshape(GS, Tp, D) * ws_ref[...], axis=-1)
               + bs_ref[0, 0])                                      # (GS, Tp) f32

        # ---- masked softmax over tokens; fully-masked sentences -> all-zero attention ----
        m_pos = mask_ref[...].reshape(GS, Tp) > 0.0
        raw_m = jnp.where(m_pos, raw, -1e30)
        smax = jnp.max(raw_m, axis=-1, keepdims=True)
        row_valid = smax > -1e29
        e = jnp.exp(raw_m - jnp.where(row_valid, smax, 0.0))
        denom = jnp.sum(e, axis=-1, keepdims=True)
        att = e / jnp.where(row_valid, denom, 1.0)                  # (GS, Tp) f32

        # ---- attention-weighted token sum: VPU multiply + sublane reduce (no M=1 matmuls) ----
        x3 = x2b.reshape(GS, Tp, D).astype(jnp.float32)
        sent = jnp.sum(att[:, :, None] * x3, axis=1)                # (GS, D) f32
        reps_ref[...] = sent.reshape(G, S, D).astype(reps_ref.dtype)

        # ---- ClassificationHead (dense -> tanh -> out_proj), fused, lane-dense output ----
        h = jnp.tanh(
            jnp.dot(sent.astype(jnp.bfloat16), wd_ref[...],
                    preferred_element_type=jnp.float32) + bd_ref[...])
        logits = (jnp.dot(h.astype(jnp.bfloat16), wo_ref[...],
                          preferred_element_type=jnp.float32) + bo_ref[...])
        logits_ref[...] = logits.reshape(G, S, P).astype(logits_ref.dtype)

    return kernel


def _pick_group(B, S, Tp, L, D, budget_bytes):
    """Largest-feasible / >=256-row batch grouping G (divisor of B) under a VMEM budget."""
    feasible = []
    for g in range(1, B + 1):
        if B % g:
            continue
        r = g * S * Tp
        est = (2 * g * L * D * 2        # double-buffered bf16 slab
               + r * (g * L) * 2        # one-hot gather matrix (bf16, transient)
               + 8 * r * D * 4)         # gathered rows / proj / temporaries (f32-ish)
        if est <= budget_bytes:
            feasible.append(g)
    if not feasible:
        return 1
    for g in feasible:
        if g * S * Tp >= 256:           # enough rows to fill the 256-wide MXU (v6e/v7x)
            return g
    return feasible[-1]


def rationale_pallas_forward(bert_out, indices_by_batch, token_mask, params,
                             *, vmem_limit_mb=48):
    """WordAttention (fused VMEM gather) + ClassificationHead in one Pallas kernel."""
    B, S, T = token_mask.shape
    L, D = bert_out.shape[1], bert_out.shape[2]
    wp, bp, ws, bs, wd, bd, wo, bo = params
    num_labels = wo.shape[1]
    P = 128 * pl.cdiv(max(num_labels, 1), 128)          # lane-dense padded logits width

    # Pad tokens-per-sentence to a multiple of 8 so in-kernel reshapes stay tile-aligned.
    Tp = 8 * pl.cdiv(T, 8)
    pad_t = Tp - T
    idx_p = jnp.pad(indices_by_batch.astype(jnp.int32), ((0, 0), (0, 0), (0, pad_t)))
    mask_p = jnp.pad(token_mask.astype(jnp.float32), ((0, 0), (0, 0), (0, pad_t)))

    vmem_limit = vmem_limit_mb * 1024 * 1024
    G = _pick_group(B, S, Tp, L, D, budget_bytes=(3 * vmem_limit) // 4)
    R = G * S * Tp

    # Slab-local gather indices: batch b lives at rows [(b % G) * L, ...) of its step's slab.
    local_off = (jnp.arange(B, dtype=jnp.int32) % G) * L
    idx_local = (idx_p + local_off[:, None, None]).reshape(B // G, R, 1)

    bert_slab = bert_out.astype(jnp.bfloat16)            # (B, L, D) bf16, contiguous-DMA'd

    wp_b = wp.astype(jnp.bfloat16)
    wd_b = wd.astype(jnp.bfloat16)
    ws_row = ws.reshape(1, D)
    wo_pad = (jnp.zeros((D, P), jnp.float32).at[:, :num_labels].set(wo)
              .astype(jnp.bfloat16))
    bo_pad = jnp.zeros((1, P), jnp.float32).at[:, :num_labels].set(bo)

    kernel = _make_fused_kernel(G, S, Tp, L, D, P)
    sentence_reps, logits_pad = pl.pallas_call(
        kernel,
        grid=(B // G,),
        in_specs=[
            pl.BlockSpec((1, R, 1),  lambda i: (i, 0, 0)),          # gather indices
            pl.BlockSpec((G, S, Tp), lambda i: (i, 0, 0)),          # token mask
            pl.BlockSpec((G, L, D),  lambda i: (i, 0, 0)),          # bert slab (bf16)
            pl.BlockSpec((D, D),     lambda i: (0, 0)),             # att_proj W
            pl.BlockSpec((1, D),     lambda i: (0, 0)),             # att_proj b
            pl.BlockSpec((1, D),     lambda i: (0, 0)),             # att_scorer w row
            pl.BlockSpec(memory_space=pltpu.MemorySpace.SMEM),      # att_scorer b (scalar)
            pl.BlockSpec((D, D),     lambda i: (0, 0)),             # head dense W
            pl.BlockSpec((1, D),     lambda i: (0, 0)),             # head dense b
            pl.BlockSpec((D, P),     lambda i: (0, 0)),             # head out_proj W (padded)
            pl.BlockSpec((1, P),     lambda i: (0, 0)),             # head out_proj b (padded)
        ],
        out_specs=(
            pl.BlockSpec((G, S, D), lambda i: (i, 0, 0)),
            pl.BlockSpec((G, S, P), lambda i: (i, 0, 0)),
        ),
        out_shape=(
            jax.ShapeDtypeStruct((B, S, D), jnp.float32),
            jax.ShapeDtypeStruct((B, S, P), jnp.float32),
        ),
        compiler_params=pltpu.CompilerParams(
            dimension_semantics=("parallel",),
            vmem_limit_bytes=vmem_limit),
    )(idx_local, mask_p, bert_slab, wp_b, bp, ws_row, bs, wd_b, bd, wo_pad, bo_pad)

    rationale_logits = logits_pad[:, :, :num_labels]
    # TODO(synk): assumes token 0 of each sentence flags sentence validity (matches the PyTorch
    #             preprocessing that builds transformation_indices / token masks).
    sentence_mask = token_mask[:, :, 0]
    return sentence_reps, rationale_logits, sentence_mask


def reference_forward(bert_out, indices_by_batch, token_mask, params):
    """Pure-JAX reference with matching bf16/f32 precision choices."""
    wp, bp, ws, bs, wd, bd, wo, bo = params
    B, S, T = token_mask.shape
    D = bert_out.shape[-1]
    bidx = jnp.arange(B)[:, None, None]
    xb = bert_out.astype(jnp.bfloat16)[bidx, indices_by_batch]          # (B,S,T,D) bf16
    proj = jnp.tanh(
        jnp.einsum('bstd,de->bste', xb, wp.astype(jnp.bfloat16),
                   preferred_element_type=jnp.float32) + bp[0])
    raw = jnp.sum(proj * ws.reshape(1, 1, 1, D), axis=-1) + bs[0, 0]    # (B,S,T)
    m = token_mask > 0
    raw_m = jnp.where(m, raw, -1e30)
    smax = jnp.max(raw_m, axis=-1, keepdims=True)
    rv = smax > -1e29
    e = jnp.exp(raw_m - jnp.where(rv, smax, 0.0))
    att = e / jnp.where(rv, jnp.sum(e, axis=-1, keepdims=True), 1.0)
    sent = jnp.sum(att[..., None] * xb.astype(jnp.float32), axis=2)     # (B,S,D)
    h = jnp.tanh(jnp.einsum('bsd,de->bse', sent.astype(jnp.bfloat16),
                            wd.astype(jnp.bfloat16),
                            preferred_element_type=jnp.float32) + bd[0])
    logits = jnp.einsum('bse,ek->bsk', h.astype(jnp.bfloat16),
                        wo.astype(jnp.bfloat16),
                        preferred_element_type=jnp.float32) + bo[0]
    return sent, logits


def cross_entropy_ignore_index(logits, labels, ignore_index=2):
    """nn.CrossEntropyLoss(ignore_index=2) semantics (mean over non-ignored)."""
    flat_logits = logits.reshape(-1, logits.shape[-1])
    flat_labels = labels.reshape(-1)
    valid = (flat_labels != ignore_index).astype(jnp.float32)
    safe_labels = jnp.clip(flat_labels, 0, logits.shape[-1] - 1)
    log_z = jax.scipy.special.logsumexp(flat_logits, axis=-1)
    picked = jnp.take_along_axis(flat_logits, safe_labels[:, None], axis=-1)[:, 0]
    nll = (log_z - picked) * valid
    return jnp.sum(nll) / jnp.maximum(jnp.sum(valid), 1.0)


def init_params(key, D, num_labels=2):
    ks = jax.random.split(key, 8)
    scale = 0.05
    wp = scale * jax.random.normal(ks[0], (D, D), jnp.float32)
    bp = scale * jax.random.normal(ks[1], (1, D), jnp.float32)
    ws = scale * jax.random.normal(ks[2], (D, 1), jnp.float32)
    bs = scale * jax.random.normal(ks[3], (1, 1), jnp.float32)
    wd = scale * jax.random.normal(ks[4], (D, D), jnp.float32)
    bd = scale * jax.random.normal(ks[5], (1, D), jnp.float32)
    wo = scale * jax.random.normal(ks[6], (D, num_labels), jnp.float32)
    bo = scale * jax.random.normal(ks[7], (1, num_labels), jnp.float32)
    return (wp, bp, ws, bs, wd, bd, wo, bo)


if __name__ == "__main__":
    # Small shapes: batch=2, seq_len=16, bert_dim=32, N_sentence=4, N_token=8
    B, L, D, S, T = 2, 16, 32, 4, 8

    key = jax.random.PRNGKey(0)
    k_bert, k_idx, k_lab, k_par = jax.random.split(key, 4)

    bert_out = jax.random.normal(k_bert, (B, L, D), jnp.float32)
    indices_by_batch = jax.random.randint(k_idx, (B, S, T), 0, L)

    token_mask = np.ones((B, S, T), dtype=np.int32)
    token_mask[:, :, T - 2:] = 0          # pad the last tokens of every sentence
    token_mask[1, S - 1, :] = 0           # one fully-masked sentence (zero-attention path)
    token_mask = jnp.asarray(token_mask)

    rationale_label = jax.random.randint(k_lab, (B, S), 0, 3)    # {0,1,2}; 2 = ignore_index
    params = init_params(k_par, D)

    fwd = jax.jit(rationale_pallas_forward)
    sentence_reps, rationale_logits, sentence_mask = fwd(
        bert_out, indices_by_batch, token_mask, params)
    jax.block_until_ready(rationale_logits)

    # numerical check against a precision-matched pure-JAX reference
    ref_reps, ref_logits = reference_forward(bert_out, indices_by_batch, token_mask, params)
    np.testing.assert_allclose(np.asarray(sentence_reps), np.asarray(ref_reps),
                               atol=5e-2, rtol=5e-2)
    np.testing.assert_allclose(np.asarray(rationale_logits), np.asarray(ref_logits),
                               atol=5e-2, rtol=5e-2)

    # valid_scores branch (sample_p=1 => torch.rand(1) < 1 is True)
    valid_scores = rationale_logits[:, :, 1] > rationale_logits[:, :, 0]

    # rationale loss (CrossEntropy with ignore_index=2)
    rationale_loss = cross_entropy_ignore_index(rationale_logits, rationale_label)

    # rationale_score=False => argmax prediction, then filter by sentence mask (host side)
    rationale_pred = jnp.argmax(rationale_logits, axis=-1)
    pred_np = np.asarray(jax.device_get(rationale_pred))
    smask_np = np.asarray(jax.device_get(sentence_mask)).astype(bool)
    rationale_out = [p[m].tolist() for p, m in zip(pred_np, smask_np)]

    jax.block_until_ready(rationale_loss)
    jax.block_until_ready(sentence_reps)
    jax.block_until_ready(valid_scores)

    assert sentence_reps.shape == (B, S, D)
    assert rationale_logits.shape == (B, S, 2)
    assert len(rationale_out) == B
    assert np.isfinite(float(rationale_loss))

    print("KERNEL_OK")
</pallas_src>

<mosaic_0001>
module attributes {stable_mosaic.version = 11 : i64} {
  func.func @kernel(%arg0: i32, %arg1: memref<1x64x1xi32, #tpu.memory_space<vmem>>, %arg2: memref<2x4x8xf32, #tpu.memory_space<vmem>>, %arg3: memref<2x16x32xbf16, #tpu.memory_space<vmem>>, %arg4: memref<32x32xbf16, #tpu.memory_space<vmem>>, %arg5: memref<1x32xf32, #tpu.memory_space<vmem>>, %arg6: memref<1x32xf32, #tpu.memory_space<vmem>>, %arg7: memref<1x1xf32, #tpu.memory_space<smem>>, %arg8: memref<32x32xbf16, #tpu.memory_space<vmem>>, %arg9: memref<1x32xf32, #tpu.memory_space<vmem>>, %arg10: memref<32x128xbf16, #tpu.memory_space<vmem>>, %arg11: memref<1x128xf32, #tpu.memory_space<vmem>>, %arg12: memref<2x4x32xf32, #tpu.memory_space<vmem>>, %arg13: memref<2x4x128xf32, #tpu.memory_space<vmem>>) attributes {dimension_semantics = [#tpu.dimension_semantics<parallel>], iteration_bounds = array<i64: 1>, scalar_prefetch = 0 : i64, scratch_operands = 0 : i64, tpu.core_type = #tpu.core_type<tc>, window_params = [{transform_indices = @transform_0, window_bounds = array<i64: 1, 64, 1>}, {transform_indices = @transform_1, window_bounds = array<i64: 2, 4, 8>}, {transform_indices = @transform_2, window_bounds = array<i64: 2, 16, 32>}, {pipeline_mode = #tpu.pipeline_mode<synchronous>, transform_indices = @transform_3, window_bounds = array<i64: 32, 32>}, {pipeline_mode = #tpu.pipeline_mode<synchronous>, transform_indices = @transform_4, window_bounds = array<i64: 1, 32>}, {pipeline_mode = #tpu.pipeline_mode<synchronous>, transform_indices = @transform_5, window_bounds = array<i64: 1, 32>}, {transform_indices = @transform_6, window_bounds = array<i64: 1, 1>}, {pipeline_mode = #tpu.pipeline_mode<synchronous>, transform_indices = @transform_7, window_bounds = array<i64: 32, 32>}, {pipeline_mode = #tpu.pipeline_mode<synchronous>, transform_indices = @transform_8, window_bounds = array<i64: 1, 32>}, {pipeline_mode = #tpu.pipeline_mode<synchronous>, transform_indices = @transform_9, window_bounds = array<i64: 32, 128>}, {pipeline_mode = #tpu.pipeline_mode<synchronous>, transform_indices = @transform_10, window_bounds = array<i64: 1, 128>}, {transform_indices = @transform_11, window_bounds = array<i64: 2, 4, 32>}, {transform_indices = @transform_12, window_bounds = array<i64: 2, 4, 128>}]} {
    %c0 = arith.constant 0 : index
    %c0_0 = arith.constant 0 : index
    %c0_1 = arith.constant 0 : index
    %0 = vector.load %arg1[%c0, %c0_0, %c0_1] : memref<1x64x1xi32, #tpu.memory_space<vmem>>, vector<1x64x1xi32>
    %1 = vector.shape_cast %0 : vector<1x64x1xi32> to vector<64x1xi32>
    %2 = tpu.iota {dimensions = array<i32: 1>} : vector<64x32xi32>
    %3 = vector.broadcast %1 : vector<64x1xi32> to vector<64x32xi32>
    %4 = arith.cmpi eq, %3, %2 : vector<64x32xi32>
    %5 = arith.extui %4 : vector<64x32xi1> to vector<64x32xi32>
    %6 = arith.sitofp %5 : vector<64x32xi32> to vector<64x32xf32>
    %7 = arith.truncf %6 : vector<64x32xf32> to vector<64x32xbf16>
    %c0_2 = arith.constant 0 : index
    %c0_3 = arith.constant 0 : index
    %c0_4 = arith.constant 0 : index
    %8 = vector.load %arg3[%c0_2, %c0_3, %c0_4] : memref<2x16x32xbf16, #tpu.memory_space<vmem>>, vector<2x16x32xbf16>
    %9 = vector.shape_cast %8 : vector<2x16x32xbf16> to vector<32x32xbf16>
    %cst = arith.constant dense<0.000000e+00> : vector<64x32xf32>
    %10 = tpu.matmul %7, %9, %cst {dimension_numbers = #tpu.dot_dimension_numbers<[1], [0], [0], [1], [0, 0, 1, 1], [], []>} : vector<64x32xbf16>, vector<32x32xbf16>, vector<64x32xf32> -> vector<64x32xf32>
    %11 = arith.truncf %10 : vector<64x32xf32> to vector<64x32xbf16>
    %c0_5 = arith.constant 0 : index
    %c0_6 = arith.constant 0 : index
    %12 = vector.load %arg4[%c0_5, %c0_6] : memref<32x32xbf16, #tpu.memory_space<vmem>>, vector<32x32xbf16>
    %cst_7 = arith.constant dense<0.000000e+00> : vector<64x32xf32>
    %13 = tpu.matmul %11, %12, %cst_7 {dimension_numbers = #tpu.dot_dimension_numbers<[1], [0], [0], [1], [0, 0, 1, 1], [], []>} : vector<64x32xbf16>, vector<32x32xbf16>, vector<64x32xf32> -> vector<64x32xf32>
    %c0_8 = arith.constant 0 : index
    %c0_9 = arith.constant 0 : index
    %14 = vector.load %arg5[%c0_8, %c0_9] : memref<1x32xf32, #tpu.memory_space<vmem>>, vector<1x32xf32>
    %15 = vector.broadcast %14 : vector<1x32xf32> to vector<64x32xf32>
    %16 = arith.addf %13, %15 : vector<64x32xf32>
    %17 = math.tanh %16 : vector<64x32xf32>
    %18 = vector.shape_cast %17 : vector<64x32xf32> to vector<8x8x32xf32>
    %c0_10 = arith.constant 0 : index
    %c0_11 = arith.constant 0 : index
    %19 = vector.load %arg6[%c0_10, %c0_11] : memref<1x32xf32, #tpu.memory_space<vmem>>, vector<1x32xf32>
    %20 = vector.shape_cast %19 : vector<1x32xf32> to vector<1x1x32xf32>
    %21 = vector.broadcast %20 : vector<1x1x32xf32> to vector<8x8x32xf32>
    %22 = arith.mulf %18, %21 : vector<8x8x32xf32>
    %cst_12 = arith.constant dense<0.000000e+00> : vector<8x8xf32>
    %23 = vector.multi_reduction <add>, %22, %cst_12 [2] : vector<8x8x32xf32> to vector<8x8xf32>
    %c0_13 = arith.constant 0 : index
    %c0_14 = arith.constant 0 : index
    %24 = memref.load %arg7[%c0_13, %c0_14] : memref<1x1xf32, #tpu.memory_space<smem>>
    %25 = vector.broadcast %24 : f32 to vector<8x8xf32>
    %26 = arith.addf %23, %25 : vector<8x8xf32>
    %c0_15 = arith.constant 0 : index
    %c0_16 = arith.constant 0 : index
    %c0_17 = arith.constant 0 : index
    %27 = vector.load %arg2[%c0_15, %c0_16, %c0_17] : memref<2x4x8xf32, #tpu.memory_space<vmem>>, vector<2x4x8xf32>
    %28 = vector.shape_cast %27 : vector<2x4x8xf32> to vector<8x8xf32>
    %cst_18 = arith.constant 0.000000e+00 : f32
    %29 = vector.broadcast %cst_18 : f32 to vector<8x8xf32>
    %30 = arith.cmpf ogt, %28, %29 : vector<8x8xf32>
    %cst_19 = arith.constant -1.000000e+30 : f32
    %31 = vector.broadcast %cst_19 : f32 to vector<8x8xf32>
    %32 = arith.select %30, %26, %31 : vector<8x8xi1>, vector<8x8xf32>
    %cst_20 = arith.constant dense<0xFF800000> : vector<8xf32>
    %33 = vector.multi_reduction <maximumf>, %32, %cst_20 [1] : vector<8x8xf32> to vector<8xf32>
    %34 = vector.shape_cast %33 : vector<8xf32> to vector<8x1xf32>
    %cst_21 = arith.constant -1.000000e+29 : f32
    %35 = vector.broadcast %cst_21 : f32 to vector<8x1xf32>
    %36 = arith.cmpf ogt, %34, %35 : vector<8x1xf32>
    %cst_22 = arith.constant 0.000000e+00 : f32
    %37 = vector.broadcast %cst_22 : f32 to vector<8x1xf32>
    %38 = arith.select %36, %34, %37 : vector<8x1xi1>, vector<8x1xf32>
    %39 = vector.broadcast %38 : vector<8x1xf32> to vector<8x8xf32>
    %40 = arith.subf %32, %39 : vector<8x8xf32>
    %41 = math.exp %40 : vector<8x8xf32>
    %cst_23 = arith.constant dense<0.000000e+00> : vector<8xf32>
    %42 = vector.multi_reduction <add>, %41, %cst_23 [1] : vector<8x8xf32> to vector<8xf32>
    %43 = vector.shape_cast %42 : vector<8xf32> to vector<8x1xf32>
    %cst_24 = arith.constant 1.000000e+00 : f32
    %44 = vector.broadcast %cst_24 : f32 to vector<8x1xf32>
    %45 = arith.select %36, %43, %44 : vector<8x1xi1>, vector<8x1xf32>
    %46 = vector.broadcast %45 : vector<8x1xf32> to vector<8x8xf32>
    %47 = arith.divf %41, %46 : vector<8x8xf32>
    %48 = vector.shape_cast %11 : vector<64x32xbf16> to vector<8x8x32xbf16>
    %49 = arith.extf %48 : vector<8x8x32xbf16> to vector<8x8x32xf32>
    %50 = vector.shape_cast %47 : vector<8x8xf32> to vector<8x8x1xf32>
    %51 = vector.broadcast %50 : vector<8x8x1xf32> to vector<8x8x32xf32>
    %52 = arith.mulf %51, %49 : vector<8x8x32xf32>
    %cst_25 = arith.constant dense<0.000000e+00> : vector<8x32xf32>
    %53 = vector.multi_reduction <add>, %52, %cst_25 [1] : vector<8x8x32xf32> to vector<8x32xf32>
    %54 = vector.shape_cast %53 : vector<8x32xf32> to vector<2x4x32xf32>
    %c0_26 = arith.constant 0 : index
    %c0_27 = arith.constant 0 : index
    %c0_28 = arith.constant 0 : index
    %55 = vector.load %arg12[%c0_26, %c0_27, %c0_28] : memref<2x4x32xf32, #tpu.memory_space<vmem>>, vector<2x4x32xf32>
    tpu.vector_store %arg12[%c0_26, %c0_27, %c0_28], %54 {strides = array<i32>} : memref<2x4x32xf32, #tpu.memory_space<vmem>>, vector<2x4x32xf32>,
    %56 = arith.truncf %53 : vector<8x32xf32> to vector<8x32xbf16>
    %c0_29 = arith.constant 0 : index
    %c0_30 = arith.constant 0 : index
    %57 = vector.load %arg8[%c0_29, %c0_30] : memref<32x32xbf16, #tpu.memory_space<vmem>>, vector<32x32xbf16>
    %cst_31 = arith.constant dense<0.000000e+00> : vector<8x32xf32>
    %58 = tpu.matmul %56, %57, %cst_31 {dimension_numbers = #tpu.dot_dimension_numbers<[1], [0], [0], [1], [0, 0, 1, 1], [], []>} : vector<8x32xbf16>, vector<32x32xbf16>, vector<8x32xf32> -> vector<8x32xf32>
    %c0_32 = arith.constant 0 : index
    %c0_33 = arith.constant 0 : index
    %59 = vector.load %arg9[%c0_32, %c0_33] : memref<1x32xf32, #tpu.memory_space<vmem>>, vector<1x32xf32>
    %60 = vector.broadcast %59 : vector<1x32xf32> to vector<8x32xf32>
    %61 = arith.addf %58, %60 : vector<8x32xf32>
    %62 = math.tanh %61 : vector<8x32xf32>
    %63 = arith.truncf %62 : vector<8x32xf32> to vector<8x32xbf16>
    %c0_34 = arith.constant 0 : index
    %c0_35 = arith.constant 0 : index
    %64 = vector.load %arg10[%c0_34, %c0_35] : memref<32x128xbf16, #tpu.memory_space<vmem>>, vector<32x128xbf16>
    %cst_36 = arith.constant dense<0.000000e+00> : vector<8x128xf32>
    %65 = tpu.matmul %63, %64, %cst_36 {dimension_numbers = #tpu.dot_dimension_numbers<[1], [0], [0], [1], [0, 0, 1, 1], [], []>} : vector<8x32xbf16>, vector<32x128xbf16>, vector<8x128xf32> -> vector<8x128xf32>
    %c0_37 = arith.constant 0 : index
    %c0_38 = arith.constant 0 : index
    %66 = vector.load %arg11[%c0_37, %c0_38] : memref<1x128xf32, #tpu.memory_space<vmem>>, vector<1x128xf32>
    %67 = vector.broadcast %66 : vector<1x128xf32> to vector<8x128xf32>
    %68 = arith.addf %65, %67 : vector<8x128xf32>
    %69 = vector.shape_cast %68 : vector<8x128xf32> to vector<2x4x128xf32>
    %c0_39 = arith.constant 0 : index
    %c0_40 = arith.constant 0 : index
    %c0_41 = arith.constant 0 : index
    %70 = vector.load %arg13[%c0_39, %c0_40, %c0_41] : memref<2x4x128xf32, #tpu.memory_space<vmem>>, vector<2x4x128xf32>
    tpu.vector_store %arg13[%c0_39, %c0_40, %c0_41], %69 {strides = array<i32>} : memref<2x4x128xf32, #tpu.memory_space<vmem>>, vector<2x4x128xf32>,
    return
  }
  func.func @transform_0(%arg0: i32) -> (i32, i32, i32) {
    %c0_i32 = arith.constant 0 : i32
    %c0_i32_0 = arith.constant 0 : i32
    %c0_i32_1 = arith.constant 0 : i32
    return %arg0, %c0_i32, %c0_i32_0 : i32, i32, i32
  }
  func.func @transform_1(%arg0: i32) -> (i32, i32, i32) {
    %c0_i32 = arith.constant 0 : i32
    %c0_i32_0 = arith.constant 0 : i32
    %c0_i32_1 = arith.constant 0 : i32
    return %arg0, %c0_i32, %c0_i32_0 : i32, i32, i32
  }
  func.func @transform_2(%arg0: i32) -> (i32, i32, i32) {
    %c0_i32 = arith.constant 0 : i32
    %c0_i32_0 = arith.constant 0 : i32
    %c0_i32_1 = arith.constant 0 : i32
    return %arg0, %c0_i32, %c0_i32_0 : i32, i32, i32
  }
  func.func @transform_3(%arg0: i32) -> (i32, i32) {
    %c0_i32 = arith.constant 0 : i32
    %c0_i32_0 = arith.constant 0 : i32
    %c0_i32_1 = arith.constant 0 : i32
    return %c0_i32, %c0_i32_0 : i32, i32
  }
  func.func @transform_4(%arg0: i32) -> (i32, i32) {
    %c0_i32 = arith.constant 0 : i32
    %c0_i32_0 = arith.constant 0 : i32
    %c0_i32_1 = arith.constant 0 : i32
    return %c0_i32, %c0_i32_0 : i32, i32
  }
  func.func @transform_5(%arg0: i32) -> (i32, i32) {
    %c0_i32 = arith.constant 0 : i32
    %c0_i32_0 = arith.constant 0 : i32
    %c0_i32_1 = arith.constant 0 : i32
    return %c0_i32, %c0_i32_0 : i32, i32
  }
  func.func @transform_6(%arg0: i32) -> (i32, i32) {
    %c0_i32 = arith.constant 0 : i32
    %c0_i32_0 = arith.constant 0 : i32
    %c0_i32_1 = arith.constant 0 : i32
    return %c0_i32, %c0_i32_0 : i32, i32
  }
  func.func @transform_7(%arg0: i32) -> (i32, i32) {
    %c0_i32 = arith.constant 0 : i32
    %c0_i32_0 = arith.constant 0 : i32
    %c0_i32_1 = arith.constant 0 : i32
    return %c0_i32, %c0_i32_0 : i32, i32
  }
  func.func @transform_8(%arg0: i32) -> (i32, i32) {
    %c0_i32 = arith.constant 0 : i32
    %c0_i32_0 = arith.constant 0 : i32
    %c0_i32_1 = arith.constant 0 : i32
    return %c0_i32, %c0_i32_0 : i32, i32
  }
  func.func @transform_9(%arg0: i32) -> (i32, i32) {
    %c0_i32 = arith.constant 0 : i32
    %c0_i32_0 = arith.constant 0 : i32
    %c0_i32_1 = arith.constant 0 : i32
    return %c0_i32, %c0_i32_0 : i32, i32
  }
  func.func @transform_10(%arg0: i32) -> (i32, i32) {
    %c0_i32 = arith.constant 0 : i32
    %c0_i32_0 = arith.constant 0 : i32
    %c0_i32_1 = arith.constant 0 : i32
    return %c0_i32, %c0_i32_0 : i32, i32
  }
  func.func @transform_11(%arg0: i32) -> (i32, i32, i32) {
    %c0_i32 = arith.constant 0 : i32
    %c0_i32_0 = arith.constant 0 : i32
    %c0_i32_1 = arith.constant 0 : i32
    return %arg0, %c0_i32, %c0_i32_0 : i32, i32, i32
  }
  func.func @transform_12(%arg0: i32) -> (i32, i32, i32) {
    %c0_i32 = arith.constant 0 : i32
    %c0_i32_0 = arith.constant 0 : i32
    %c0_i32_1 = arith.constant 0 : i32
    return %arg0, %c0_i32, %c0_i32_0 : i32, i32, i32
  }
}

</mosaic_0001>

<bundles_post_ra>
// kernel: rationale_pallas_forward.1
= control target key start
LH: loop header
LB: loop body
LE: loop exit
PB: predicated region body
PF: predicated region fallthrough
CT: control target
= control target key end

     0   :  { %v1169_v2 = vmov 0   ;;  %s1476_s0 = inlined_call_operand.vmem [shape: s32[1,64,1], index: 0, kind: input, shape index: {}]   ;;  %s1477_s1 = inlined_call_operand.vmem [shape: f32[2,4,8], index: 1, kind: input, shape index: {}]   ;;  %s1478_s2 = inlined_call_operand.vmem [shape: bf16[2,16,32], index: 2, kind: input, shape index: {}]   ;;  %s1479_s3 = inlined_call_operand.vmem [shape: bf16[32,32], index: 3, kind: input, shape index: {}]   ;;  %s1480_s4 = inlined_call_operand.vmem [shape: f32[1,32], index: 4, kind: input, shape index: {}]   ;;  %s1481_s5 = inlined_call_operand.vmem [shape: f32[1,32], index: 5, kind: input, shape index: {}]   ;;  %s1482_s6 = inlined_call_operand.<no memory space> [shape: f32[1,1], index: 6, kind: input, shape index: {}]   ;;  %s1483_s7 = inlined_call_operand.vmem [shape: bf16[32,32], index: 7, kind: input, shape index: {}]   ;;  %s1484_s8 = inlined_call_operand.vmem [shape: f32[1,32], index: 8, kind: input, shape index: {}]   ;;  %s1485_s9 = inlined_call_operand.vmem [shape: bf16[32,128], index: 9, kind: input, shape index: {}]   ;;  %s1486_s10 = inlined_call_operand.vmem [shape: f32[1,128], index: 10, kind: input, shape index: {}]   ;;  %s1487_s11 = inlined_call_operand.hbm [shape: f32[2,4,32], index: 11, kind: output, shape index: {0}]   ;;  %s1488_s12 = inlined_call_operand.vmem [shape: f32[2,4,128], index: 12, kind: output, shape index: {1}]  }
   0x1   :  { %v45_v0 = vld [vmem:[%s1476_s0 + $0x10] sm:$0xff]  ;;  %v43_v1 = vld [vmem:[%s1476_s0] sm:$0xff]  ;;  %1112 = vset.pattern.permute.xlu1 %v1169_v2  ;;  %1111 = vset.pattern.permute.xlu0 %v1169_v2  ;;  %v46_v3 = vld [vmem:[%s1476_s0 + $0x18] sm:$0xff] }
   0x2   :  { %60 = vperm.xlu1 %1112, %v45_v0   ;;  %54 = vperm.xlu0 %1111, %v43_v1   ;;  %v44_v4 = vld [vmem:[%s1476_s0 + $0x8] sm:$0xff]  ;;  %v1114_v6 = vld [vmem:[%s1478_s2] sm:$0xff]  }
   0x3   :  { %v1113_v5 = vld [vmem:[%s1478_s2 + $0x8] sm:$0xff]   ;;  %v47_v8 = vld [vmem:[%s1476_s0 + $0x20] sm:$0xff] }
   0x4   :  { %v48_v7 = vld [vmem:[%s1476_s0 + $0x28] sm:$0xff]  ;;  %1063 = vmatprep.subr.bf16.mxu0 %v1113_v5 }
   0x5   :  { %1064 = vmatpush3.bf16.msra.mxu0 %v1113_v5 }
   0x6   :  { %63 = vperm.xlu1 %1112, %v46_v3   ;;  %57 = vperm.xlu0 %1111, %v44_v4  }
   0x7   :  { %1065 = vmatprep.subr.bf16.mxu0 %v1114_v6 }
   0x8   :  { %19 = vsyncpa [#allocation4], 0  ;;  %v50_v9 = vld [vmem:[%s1476_s0 + $0x38] sm:$0xff]  ;;  %v49_v10 = vld [vmem:[%s1476_s0 + $0x30] sm:$0xff]  ;;  %v1170_v11 = vmov 0.0   ;;  %v51_v12 = vlaneseq  ;;  %vm121_vm4 = vcmask 261120  }
   0x9   :  { %1066 = vmatpush3.bf16.msra.mxu0 %v1114_v6  ;;  %v1115_v34 = vld [vmem:[%s1479_s3 + $0x8] sm:$0xff]   ;;  %v1116_v35 = vld [vmem:[%s1479_s3] sm:$0xff]   ;;  %vm548_vm9 = vcmask 1041409   ;;  %vm550_vm10 = vcmask 1042434   ;;  %vm552_vm11 = vcmask 1043459   ;;  %vm554_vm12 = vcmask 1044484  }
   0xa   :  { %69 = vperm.xlu1 %1112, %v48_v7   ;;  %66 = vperm.xlu0 %1111, %v47_v8   ;;  %v1274_v13 = vand.u32 127, %v51_v12  ;;  %v1013_v48 = vld [vmem:[%s1480_s4] ss:$0 sm:$0xff]  ;;  %vm556_vm13 = vcmask 1045509   ;;  %vm558_vm14 = vcmask 1046534   ;;  %vm560_vm15 = vcmask 1047559  }
   0xb   :  { %1087 = vmatprep.subr.bf16.mxu0 %v1170_v11  ;;  %1075 = vmatprep.subr.bf16.mxu1 %v1115_v34  ;;  %v1020_v0 = vld [vmem:[%s1481_s5] ss:$0 sm:$0xff]  ;;  %s1174_s2 = smov [#allocation3]  }
   0xc   :  { %1076 = vmatpush3.bf16.msra.mxu1 %v1115_v34  ;;  %s984_s21 = sshll.u32 %s1174_s2, 4  ;;  %s985_s21 = int_to_ptr.vmem [resolvable:$true] %s984_s21 }
   0xd   :  { %1077 = vmatprep.subr.bf16.mxu1 %v1116_v35  ;;  %s1147_s0 = scalar_lea.vmem %s985_s21, 128  ;;  %p1152_p1 = scmp.lt.s32.totalorder %s985_s21, %s985_s21 }
   0xe   :  { %75 = vperm.xlu1 %1112, %v50_v9   ;;  %72 = vperm.xlu0 %1111, %v49_v10   ;;  %p1148_p0 = scmp.ne.s32.totalorder %s985_s21, %s1147_s0  ;;  %p1153_p2 = scmp.lt.s32.totalorder %s1147_s0, %s1147_s0 }
  0x10   :  { %1078 = vmatpush3.bf16.msra.mxu1 %v1116_v35  ;;  %p1154_p3 = por %p1153_p2, %p1152_p1 }
  0x11   :  { %1095 = vmatprep.subr.bf16.mxu1 %v1170_v11 }
  0x12   :  { %p1155_p4 = pnand %p1154_p3, %p1148_p0 }
  0x7d   :  { %v61_v14 = vpop.permute.xlu1 %60  ;;  %v55_v15 = vpop.permute.xlu0 %54 }
  0x7e   :  { %vm79_vm0 = vcmp.eq.s32.totalorder %v61_v14, %v1274_v13  ;;  %vm77_vm1 = vcmp.eq.s32.totalorder %v55_v15, %v1274_v13 }
  0x7f   :  { %v1001_v18 = vsel %vm79_vm0, 1.0, %v1170_v11  ;;  %v999_v19 = vsel %vm77_vm1, 1.0, %v1170_v11 }
  0x81   :  { %v64_v16 = vpop.permute.xlu1 %63  ;;  %v58_v17 = vpop.permute.xlu0 %57 }
  0x82   :  { %vm80_vm2 = vcmp.eq.s32.totalorder %v64_v16, %v1274_v13  ;;  %vm78_vm3 = vcmp.eq.s32.totalorder %v58_v17, %v1274_v13 }
  0x83   :  { %v1002_v20 = vsel %vm80_vm2, 1.0, %v1170_v11  ;;  %v1000_v21 = vsel %vm78_vm3, 1.0, %v1170_v11  ;;  %vm571_vm2 = vcmask 64512  }
  0x84   :  { %v102_v22 = vpack.c.bf16 %v1002_v20, %v1001_v18  ;;  %v101_v23 = vpack.c.bf16 %v1000_v21, %v999_v19 }
  0x85   :  { %v70_v24 = vpop.permute.xlu1 %69  ;;  %v67_v25 = vpop.permute.xlu0 %66 }
  0x86   :  { %vm82_vm5 = vcmp.eq.s32.totalorder %v70_v24, %v1274_v13  ;;  %vm81_vm6 = vcmp.eq.s32.totalorder %v67_v25, %v1274_v13  ;;  %1067 = vmatprep.mubr.msk.bf16.mxu0 %vm121_vm4, %v101_v23 }
  0x87   :  { %v1004_v26 = vsel %vm82_vm5, 1.0, %v1170_v11  ;;  %v1003_v27 = vsel %vm81_vm6, 1.0, %v1170_v11  ;;  %1068 = vmatmul.mubr.msk.bf16.vlgmr.msra.gmra.mxu0 %vm121_vm4, %v102_v22  ;;  %vm1173_vm5 = vmmov 0   ;;  %vm805_vm6 = vcmask 257024  }
  0x88   :  { %v103_v28 = vpack.c.bf16 %v1004_v26, %v1003_v27 }
  0x89   :  { %v76_v29 = vpop.permute.xlu1 %75  ;;  %v73_v30 = vpop.permute.xlu0 %72 }
  0x8a   :  { %vm84_vm7 = vcmp.eq.s32.totalorder %v76_v29, %v1274_v13  ;;  %vm83_vm8 = vcmp.eq.s32.totalorder %v73_v30, %v1274_v13  ;;  %1071 = vmatprep.mubr.msk.bf16.mxu0 %vm121_vm4, %v103_v28  ;;  %v1171_v29 = vmov 839922192  }
  0x8b   :  { %v1006_v31 = vsel %vm84_vm7, 1.0, %v1170_v11  ;;  %v1005_v32 = vsel %vm83_vm8, 1.0, %v1170_v11  ;;  %v373_v30 = vunpack.c.l.s4 %v1171_v29 }
  0x8c   :  { %v104_v33 = vpack.c.bf16 %v1006_v31, %v1005_v32  ;;  %v1172_v31 = vmov 1985246804  }
  0x8d   :  { %v380_v32 = vunpack.c.l.s4 %v1172_v31  ;;  %v374_v34 = vunpack.c.0.s8 %v373_v30 }
  0x8f   :  { %1072 = vmatmul.mubr.msk.bf16.gmra.mxu0 %vm121_vm4, %v104_v33  ;;  %v1346_v33 = vshrl.u32 %v51_v12, 7  ;;  %v381_v35 = vunpack.c.0.s8 %v380_v32 }
  0x90   :  { %1091 = vmatprep.mubr.msk.bf16.mxu0 %vm1173_vm5, %v1170_v11 }
 0x147   :  { %v1303_v36 = vpop.f32.mrf.mxu0 }
 0x149   :  { %v1305_v37 = vpop.f32.mrf.mxu0 }
 0x14b   :  { %v1307_v38 = vpop.f32.mrf.mxu0 }
 0x14c   :  { %v200_v41 = vpack.c.bf16 %v1307_v38, %v1303_v36 }
 0x14d   :  { %v1309_v39 = vpop.f32.mrf.mxu0 }
 0x14e   :  { %v199_v40 = vpack.c.bf16 %v1309_v39, %v1305_v37 }
 0x14f   :  { %v1315_v42 = vpop.f32.mrf.mxu0 }
 0x150   :  { %1079 = vmatprep.mubr.msk.bf16.mxu1 %vm121_vm4, %v199_v40  ;;  %v351_v40 = vstv %s1482_s6 }
 0x151   :  { %v1318_v43 = vpop.f32.mrf.mxu0  ;;  %1080 = vmatmul.mubr.msk.bf16.vlgmr.msra.gmra.mxu1 %vm121_vm4, %v200_v41  ;;  %v1352_v41 = vsub.s32 %v374_v34, %v1346_v33 }
 0x153   :  { %v1321_v44 = vpop.f32.mrf.mxu0 }
 0x154   :  { %v202_v47 = vpack.c.bf16 %v1321_v44, %v1315_v42 }
 0x155   :  { %v1323_v45 = vpop.f32.mrf.mxu0 }
 0x156   :  { %v201_v46 = vpack.c.bf16 %v1323_v45, %v1318_v43 }
 0x158   :  { %1083 = vmatprep.mubr.msk.bf16.mxu1 %vm121_vm4, %v201_v46  ;;  %v1355_v46 = vsub.s32 %v381_v35, %v1346_v33 }
 0x159   :  { %1084 = vmatmul.mubr.msk.bf16.gmra.mxu1 %vm121_vm4, %v202_v47 }
 0x15a   :  { %1099 = vmatprep.mubr.msk.bf16.mxu1 %vm1173_vm5, %v1170_v11 }
 0x211   :  { %v1081_v49 = vpop.f32.mrf.mxu1 }
 0x212   :  { %v281_v50 = vadd.f32 %v1081_v49, %v1013_v48 }
 0x213   :  { %v272_v51 = vpop.f32.mrf.mxu1 }
 0x214   :  { %1121 = vtanh.f32 %v281_v50  ;;  %v273_v52 = vadd.f32 %v1013_v48, %v272_v51 }
 0x215   :  { %v1082_v53 = vpop.f32.mrf.mxu1 }
 0x216   :  { %1123 = vtanh.f32 %v273_v52  ;;  %v284_v54 = vadd.f32 %v1082_v53, %v1013_v48 }
 0x217   :  { %v275_v55 = vpop.f32.mrf.mxu1 }
 0x218   :  { %1125 = vtanh.f32 %v284_v54  ;;  %v276_v56 = vadd.f32 %v1013_v48, %v275_v55 }
 0x219   :  { %v1085_v57 = vpop.f32.mrf.mxu1 }
 0x21a   :  { %1127 = vtanh.f32 %v276_v56  ;;  %v297_v58 = vadd.f32 %v1085_v57, %v1013_v48 }
 0x21b   :  { %v288_v59 = vpop.f32.mrf.mxu1 }
 0x21c   :  { %v289_v60 = vadd.f32 %v1013_v48, %v288_v59  ;;  %1129 = vtanh.f32 %v297_v58 }
 0x21d   :  { %v1086_v61 = vpop.f32.mrf.mxu1 }
 0x21e   :  { %1131 = vtanh.f32 %v289_v60  ;;  %v300_v62 = vadd.f32 %v1086_v61, %v1013_v48 }
 0x21f   :  { %v291_v63 = vpop.f32.mrf.mxu1 }
 0x220   :  { %v292_v1 = vadd.f32 %v1013_v48, %v291_v63  ;;  %1133 = vtanh.f32 %v300_v62 }
 0x221   :  { %v1122_v2 = vpop.eup %1121 }
 0x222   :  { %1135 = vtanh.f32 %v292_v1  ;;  %v320_v3 = vmul.f32 %v1122_v2, %v1020_v0 }
 0x223   :  { %v1124_v4 = vpop.eup %1123 }
 0x224   :  { %v332_v5 = vsel %vm121_vm4, %v320_v3, 0.0  ;;  %v318_v6 = vmul.f32 %v1124_v4, %v1020_v0 }
 0x225   :  { %v1126_v7 = vpop.eup %1125  ;;  %333 = vadd.xlane.f32.xlu0 %v332_v5 }
 0x226   :  { %v326_v9 = vsel %vm121_vm4, %v318_v6, 0.0  ;;  %v321_v14 = vmul.f32 %v1126_v7, %v1020_v0 }
 0x227   :  { %v1128_v8 = vpop.eup %1127 }
 0x228   :  { %v319_v10 = vmul.f32 %v1128_v8, %v1020_v0  ;;  %v335_v18 = vsel %vm121_vm4, %v321_v14, 0.0 }
 0x229   :  { %327 = vadd.xlane.f32.xlu0 %v326_v9  ;;  %v1130_v15 = vpop.eup %1129 }
 0x22a   :  { %v329_v16 = vsel %vm121_vm4, %v319_v10, 0.0  ;;  %v324_v22 = vmul.f32 %v1130_v15, %v1020_v0 }
 0x22b   :  { %v1132_v17 = vpop.eup %1131  ;;  %330 = vadd.xlane.f32.xlu1 %v329_v16 }
 0x22c   :  { %v322_v19 = vmul.f32 %v1132_v17, %v1020_v0  ;;  %v344_v26 = vsel %vm121_vm4, %v324_v22, 0.0 }
 0x22d   :  { %336 = vadd.xlane.f32.xlu0 %v335_v18  ;;  %v1134_v20 = vpop.eup %1133 }
 0x22e   :  { %v338_v21 = vsel %vm121_vm4, %v322_v19, 0.0  ;;  %v325_v27 = vmul.f32 %v1134_v20, %v1020_v0 }
 0x22f   :  { %v1136_v23 = vpop.eup %1135  ;;  %339 = vadd.xlane.f32.xlu1 %v338_v21 }
 0x230   :  { %v323_v24 = vmul.f32 %v1136_v23, %v1020_v0  ;;  %v347_v28 = vsel %vm121_vm4, %v325_v27, 0.0 }
 0x232   :  { %v341_v25 = vsel %vm121_vm4, %v323_v24, 0.0 }
 0x233   :  { %342 = vadd.xlane.f32.xlu0 %v341_v25  ;;  %345 = vadd.xlane.f32.xlu1 %v344_v26  ;;  %v518_v26 = vsub.s32 %v1274_v13, %v1346_v33 }
 0x237   :  { %348 = vadd.xlane.f32.xlu0 %v347_v28 }
 0x2ae   :  { %v334_v47 = vpop.xlane.xlu0 %333 }
 0x2af   :  { %v354_v48 = vadd.f32 %v351_v40, %v334_v47 }
 0x2b1   :  { %v406_v49 = vrot.slane %v354_v48, %v1352_v41  ;;  %v413_v50 = vrot.slane %v354_v48, %v1355_v46 }
 0x2b2   :  { %v328_v12 = vpop.xlane.xlu0 %327 }
 0x2b3   :  { %v352_v51 = vadd.f32 %v351_v40, %v328_v12  ;;  %v486_v52 = vcombine.low %v406_v49, %v413_v50 }
 0x2b4   :  { %v331_v53 = vpop.xlane.xlu1 %330 }
 0x2b5   :  { %v378_v54 = vrot.slane %v352_v51, %v1352_v41  ;;  %v385_v55 = vrot.slane %v352_v51, %v1355_v46  ;;  %v353_v56 = vadd.f32 %v351_v40, %v331_v53  ;;  %499 = vperm.xlu1 %1112, %v486_v52  }
 0x2b6   :  { %v337_v57 = vpop.xlane.xlu0 %336 }
 0x2b7   :  { %v392_v58 = vrot.slane %v353_v56, %v1352_v41  ;;  %v399_v59 = vrot.slane %v353_v56, %v1355_v46  ;;  %v355_v60 = vadd.f32 %v351_v40, %v337_v57  ;;  %v484_v61 = vcombine.low %v378_v54, %v385_v55  ;;  %v360_v55 = vld [vmem:[%s1477_s1] sm:$0xf]  ;;  %v361_v56 = vld [vmem:[%s1477_s1 + $0x4] sm:$0xf] }
 0x2b8   :  { %v340_v62 = vpop.xlane.xlu1 %339  ;;  %vm362_vm0 = vcmp.gt.f32.partialorder %v360_v55, 0.0  ;;  %vm363_vm1 = vcmp.gt.f32.partialorder %v361_v56, 0.0 }
 0x2b9   :  { %v420_v63 = vrot.slane %v355_v60, %v1352_v41  ;;  %v427_v0 = vrot.slane %v355_v60, %v1355_v46  ;;  %v356_v1 = vadd.f32 %v351_v40, %v340_v62  ;;  %493 = vperm.xlu1 %1112, %v484_v61   ;;  %v485_v2 = vcombine.low %v392_v58, %v399_v59 }
 0x2bb   :  { %v434_v3 = vrot.slane %v356_v1, %v1352_v41  ;;  %v441_v4 = vrot.slane %v356_v1, %v1355_v46  ;;  %496 = vperm.xlu0 %1111, %v485_v2   ;;  %v487_v5 = vcombine.low %v420_v63, %v427_v0 }
 0x2bc   :  { %v346_v6 = vpop.xlane.xlu1 %345  ;;  %v343_v7 = vpop.xlane.xlu0 %342 }
 0x2bd   :  { %v358_v8 = vadd.f32 %v351_v40, %v346_v6  ;;  %v357_v9 = vadd.f32 %v351_v40, %v343_v7  ;;  %502 = vperm.xlu1 %1112, %v487_v5   ;;  %v488_v10 = vcombine.low %v434_v3, %v441_v4 }
 0x2bf   :  { %v462_v14 = vrot.slane %v358_v8, %v1352_v41  ;;  %v469_v15 = vrot.slane %v358_v8, %v1355_v46  ;;  %v448_v16 = vrot.slane %v357_v9, %v1352_v41  ;;  %v455_v17 = vrot.slane %v357_v9, %v1355_v46  ;;  %505 = vperm.xlu0 %1111, %v488_v10  }
 0x2c0   :  { %v349_v18 = vpop.xlane.xlu0 %348 }
 0x2c1   :  { %v359_v19 = vadd.f32 %v351_v40, %v349_v18  ;;  %v490_v20 = vcombine.low %v462_v14, %v469_v15  ;;  %v489_v21 = vcombine.low %v448_v16, %v455_v17 }
 0x2c3   :  { %v476_v22 = vrot.slane %v359_v19, %v1352_v41  ;;  %v483_v23 = vrot.slane %v359_v19, %v1355_v46  ;;  %511 = vperm.xlu0 %1111, %v490_v20   ;;  %508 = vperm.xlu1 %1112, %v489_v21  }
 0x2c5   :  { %v491_v24 = vcombine.low %v476_v22, %v483_v23 }
 0x2c7   :  { %514 = vperm.xlu1 %1112, %v491_v24   ;;  %v678_v24 = vsub.s32 1, %v1346_v33 }
 0x330   :  { %v500_v25 = vpop.permute.xlu1 %499 }
 0x331   :  { %v527_v31 = vrot.slane %v500_v25, %v518_v26  ;;  %v671_v25 = vsub.s32 0, %v1346_v33 }
 0x334   :  { %v494_v27 = vpop.permute.xlu1 %493 }
 0x335   :  { %v519_v29 = vrot.slane %v494_v27, %v518_v26 }
 0x336   :  { %v497_v28 = vpop.permute.xlu0 %496 }
 0x337   :  { %v523_v30 = vrot.slane %v497_v28, %v518_v26 }
 0x338   :  { %v503_v32 = vpop.permute.xlu1 %502 }
 0x339   :  { %v549_v34 = vsel %vm548_vm9, %v523_v30, %v519_v29  ;;  %v531_v35 = vrot.slane %v503_v32, %v518_v26  ;;  %v692_v29 = vsub.s32 3, %v1346_v33  ;;  %v685_v30 = vsub.s32 2, %v1346_v33 }
 0x33a   :  { %v551_v40 = vsel %vm550_vm10, %v527_v31, %v549_v34  ;;  %v506_v47 = vpop.permute.xlu0 %505  ;;  %v706_v31 = vsub.s32 5, %v1346_v33  ;;  %v699_v32 = vsub.s32 4, %v1346_v33 }
 0x33b   :  { %v535_v48 = vrot.slane %v506_v47, %v518_v26  ;;  %v553_v49 = vsel %vm552_vm11, %v531_v35, %v551_v40  ;;  %v720_v40 = vsub.s32 7, %v1346_v33  ;;  %v713_v47 = vsub.s32 6, %v1346_v33 }
 0x33c   :  { %v1037_v33 = vpack.c.bf16 %v1305_v37, %v1305_v37 }
 0x33d   :  { %v555_v51 = vsel %vm554_vm12, %v535_v48, %v553_v49 }
 0x33e   :  { %v509_v13 = vpop.permute.xlu1 %508  ;;  %v512_v50 = vpop.permute.xlu0 %511 }
 0x33f   :  { %v539_v12 = vrot.slane %v509_v13, %v518_v26  ;;  %v543_v52 = vrot.slane %v512_v50, %v518_v26  ;;  %v1117_v13 = vld [vmem:[%s1483_s7 + $0x8] sm:$0xff]   ;;  %v1118_v50 = vld [vmem:[%s1483_s7] sm:$0xff]  }
 0x340   :  { %1088 = vmatpush3.bf16.msra.mxu0 %v1117_v13 }
 0x341   :  { %v557_v53 = vsel %vm556_vm13, %v539_v12, %v555_v51  ;;  %1089 = vmatprep.subr.bf16.mxu0 %v1170_v11  ;;  %v1038_v12 = vpack.c.bf16 %v1309_v39, %v1309_v39  ;;  %v1039_v51 = vpack.c.bf16 %v1303_v36, %v1303_v36  ;;  %v1042_v39 = vpack.c.bf16 %v1323_v45, %v1323_v45 }
 0x342   :  { %v515_v54 = vpop.permute.xlu1 %514  ;;  %v559_v58 = vsel %vm558_vm14, %v543_v52, %v557_v53  ;;  %v657_v52 = vunpack.c.l.bf16 %v1037_v33  ;;  %v1040_v53 = vpack.c.bf16 %v1307_v38, %v1307_v38 }
 0x343   :  { %v547_v57 = vrot.slane %v515_v54, %v518_v26  ;;  %v658_v54 = vunpack.c.l.bf16 %v1038_v12  ;;  %v662_v45 = vunpack.c.l.bf16 %v1042_v39 }
 0x344   :  { %1090 = vmatpush3.bf16.msra.mxu0 %v1118_v50  ;;  %v660_v37 = vunpack.c.l.bf16 %v1040_v53 }
 0x345   :  { %v561_v59 = vsel %vm560_vm15, %v547_v57, %v559_v58 }
 0x346   :  { %v562_v60 = vcombine.high %v561_v59, %v561_v59  ;;  %v565_v61 = vsel %vm362_vm0, %v561_v59, -1e+30  ;;  %v659_v59 = vunpack.c.l.bf16 %v1039_v51 }
 0x348   :  { %v566_v62 = vsel %vm363_vm1, %v562_v60, -1e+30  ;;  %v1041_v60 = vpack.c.bf16 %v1318_v43, %v1318_v43 }
 0x349   :  { %v569_v63 = vcombine.low %v565_v61, %v566_v62 }
 0x34b   :  { %v572_v0 = vsel %vm571_vm2, %v569_v63, -inf }
 0x34c   :  { %573 = vmax.xlane.f32.xlu0 %v572_v0 }
 0x3d5   :  { %v574_v1 = vpop.xlane.xlu0 %573 }
 0x3d6   :  { %vm575_vm3 = vcmp.gt.f32.partialorder %v574_v1, -1e+29 }
 0x3d7   :  { %v576_v2 = vsel %vm575_vm3, %v574_v1, 0.0 }
 0x3d8   :  { %v584_v3 = vrot.slane %v576_v2, %v1352_v41  ;;  %v591_v4 = vrot.slane %v576_v2, %v1355_v46 }
 0x3da   :  { %v594_v5 = vsub.f32 %v565_v61, %v584_v3  ;;  %v595_v6 = vsub.f32 %v566_v62, %v591_v4  ;;  %v1043_v3 = vpack.c.bf16 %v1315_v42, %v1315_v42  ;;  %v661_v4 = vunpack.c.l.bf16 %v1041_v60 }
 0x3dc   :  { %v596_v7 = vmul.f32 1.442695, %v594_v5  ;;  %v598_v8 = vmul.f32 1.442695, %v595_v6  ;;  %v1044_v6 = vpack.c.bf16 %v1321_v44, %v1321_v44 }
 0x3de   :  { %1137 = vpow2.f32 %v596_v7 }
 0x3df   :  { %1139 = vpow2.f32 %v598_v8 }
 0x3eb   :  { %v1138_v9 = vpop.eup %1137 }
 0x3ec   :  { %v1140_v10 = vpop.eup %1139 }
 0x3ed   :  { %v602_v14 = vcombine.low %v1138_v9, %v1140_v10 }
 0x3ef   :  { %v604_v15 = vsel %vm571_vm2, %v602_v14, 0.0 }
 0x3f0   :  { %605 = vadd.xlane.f32.xlu1 %v604_v15 }
 0x479   :  { %v606_v16 = vpop.xlane.xlu1 %605 }
 0x47a   :  { %v607_v17 = vsel %vm575_vm3, %v606_v16, 1.0 }
 0x47b   :  { %v615_v18 = vrot.slane %v607_v17, %v1352_v41  ;;  %v622_v19 = vrot.slane %v607_v17, %v1355_v46 }
 0x47d   :  { %1141 = vrcp.f32 %v615_v18 }
 0x47e   :  { %1143 = vrcp.f32 %v622_v19 }
 0x48a   :  { %v1142_v20 = vpop.eup %1141 }
 0x48b   :  { %v1144_v21 = vpop.eup %1143  ;;  %v626_v22 = vmul.f32 %v1142_v20, %v1138_v9 }
 0x48c   :  { %v628_v23 = vmul.f32 %v1144_v21, %v1140_v10 }
 0x48e   :  { %v667_v26 = vcombine.low %v626_v22, %v628_v23  ;;  %v663_v23 = vunpack.c.l.bf16 %v1043_v3 }
 0x490   :  { %v679_v27 = vrot.slane %v667_v26, %v678_v24  ;;  %v672_v28 = vrot.slane %v667_v26, %v671_v25  ;;  %v693_v41 = vrot.slane %v667_v26, %v692_v29  ;;  %v686_v46 = vrot.slane %v667_v26, %v685_v30 }
 0x491   :  { %v707_v34 = vrot.slane %v667_v26, %v706_v31  ;;  %v700_v35 = vrot.slane %v667_v26, %v699_v32  ;;  %v721_v48 = vrot.slane %v667_v26, %v720_v40  ;;  %v714_v49 = vrot.slane %v667_v26, %v713_v47 }
 0x492   :  { %681 = vbcast.lane.b32.xlu1 %v679_v27, 256  ;;  %674 = vbcast.lane.b32.xlu0 %v672_v28, 256  ;;  %v664_v24 = vunpack.c.l.bf16 %v1044_v6 }
 0x496   :  { %695 = vbcast.lane.b32.xlu1 %v693_v41, 256  ;;  %688 = vbcast.lane.b32.xlu0 %v686_v46, 256 }
 0x49a   :  { %709 = vbcast.lane.b32.xlu1 %v707_v34, 256  ;;  %702 = vbcast.lane.b32.xlu0 %v700_v35, 256 }
 0x49e   :  { %723 = vbcast.lane.b32.xlu1 %v721_v48, 256  ;;  %716 = vbcast.lane.b32.xlu0 %v714_v49, 256 }
 0x504   :  { %v682_v55 = vpop.permute.xlu1 %681  ;;  %v675_v56 = vpop.permute.xlu0 %674 }
 0x505   :  { %v726_v57 = vmul.f32 %v682_v55, %v658_v54  ;;  %v725_v58 = vmul.f32 %v675_v56, %v657_v52 }
 0x507   :  { %v740_v61 = vsel %vm121_vm4, %v726_v57, 0.0  ;;  %v733_v36 = vsel %vm121_vm4, %v725_v58, 0.0 }
 0x508   :  { %v741_v62 = vrot.slane %v740_v61, 4  ;;  %v734_v63 = vrot.slane %v733_v36, 4  ;;  %v696_v38 = vpop.permute.xlu1 %695  ;;  %v689_v0 = vpop.permute.xlu0 %688 }
 0x509   :  { %v728_v1 = vmul.f32 %v696_v38, %v660_v37  ;;  %v727_v2 = vmul.f32 %v689_v0, %v659_v59 }
 0x50a   :  { %v742_v5 = vadd.f32 %v741_v62, %v740_v61  ;;  %v735_v43 = vadd.f32 %v734_v63, %v733_v36 }
 0x50b   :  { %v754_v7 = vsel %vm121_vm4, %v728_v1, 0.0  ;;  %v747_v8 = vsel %vm121_vm4, %v727_v2, 0.0 }
 0x50c   :  { %v743_v9 = vrot.slane %v742_v5, 2  ;;  %v736_v10 = vrot.slane %v735_v43, 2  ;;  %v755_v14 = vrot.slane %v754_v7, 4  ;;  %v748_v15 = vrot.slane %v747_v8, 4  ;;  %v710_v16 = vpop.permute.xlu1 %709  ;;  %v703_v17 = vpop.permute.xlu0 %702 }
 0x50d   :  { %v730_v18 = vmul.f32 %v710_v16, %v662_v45  ;;  %v729_v19 = vmul.f32 %v703_v17, %v661_v4 }
 0x50e   :  { %v744_v42 = vadd.f32 %v743_v9, %v742_v5  ;;  %v737_v20 = vadd.f32 %v736_v10, %v735_v43  ;;  %v756_v21 = vadd.f32 %v755_v14, %v754_v7  ;;  %v749_v22 = vadd.f32 %v748_v15, %v747_v8 }
 0x50f   :  { %v768_v44 = vsel %vm121_vm4, %v730_v18, 0.0  ;;  %v761_v25 = vsel %vm121_vm4, %v729_v19, 0.0 }
 0x510   :  { %v745_v26 = vrot.slane %v744_v42, 1  ;;  %v738_v27 = vrot.slane %v737_v20, 1  ;;  %v757_v28 = vrot.slane %v756_v21, 2  ;;  %v750_v29 = vrot.slane %v749_v22, 2  ;;  %v724_v30 = vpop.permute.xlu1 %723  ;;  %v717_v41 = vpop.permute.xlu0 %716 }
 0x511   :  { %v769_v46 = vrot.slane %v768_v44, 4  ;;  %v762_v31 = vrot.slane %v761_v25, 4  ;;  %v732_v32 = vmul.f32 %v724_v30, %v664_v24  ;;  %v731_v34 = vmul.f32 %v717_v41, %v663_v23 }
 0x512   :  { %v746_v35 = vadd.f32 %v745_v26, %v744_v42  ;;  %v739_v40 = vadd.f32 %v738_v27, %v737_v20  ;;  %v758_v47 = vadd.f32 %v757_v28, %v756_v21  ;;  %v751_v48 = vadd.f32 %v750_v29, %v749_v22 }
 0x513   :  { %v770_v49 = vadd.f32 %v769_v46, %v768_v44  ;;  %v763_v13 = vadd.f32 %v762_v31, %v761_v25  ;;  %v782_v50 = vsel %vm121_vm4, %v732_v32, 0.0  ;;  %v775_v33 = vsel %vm121_vm4, %v731_v34, 0.0  ;;  %v1119_v34 = vld [vmem:[%s1485_s9 + $0x8] sm:$0xff]  }
 0x514   :  { %v809_v12 = vpack.c.bf16 %v746_v35, %v746_v35  ;;  %v797_v51 = vsel %vm548_vm9, %v746_v35, %v739_v40  ;;  %v808_v52 = vpack.c.bf16 %v739_v40, %v739_v40  ;;  %v759_v53 = vrot.slane %v758_v47, 1  ;;  %1096 = vmatpush3.bf16.msra.mxu1 %v1119_v34  ;;  %v1120_v35 = vld [vmem:[%s1485_s9] sm:$0xff]  }
 0x515   :  { %v752_v54 = vrot.slane %v751_v48, 1  ;;  %v771_v55 = vrot.slane %v770_v49, 2  ;;  %v764_v56 = vrot.slane %v763_v13, 2  ;;  %v783_v57 = vrot.slane %v782_v50, 4  ;;  %1097 = vmatprep.subr.bf16.mxu1 %v1170_v11  ;;  %v1029_v40 = vld [vmem:[%s1484_s8] ss:$0 sm:$0xff] }
 0x516   :  { %v836_v58 = vunpack.c.l.b16 %v809_v12  ;;  %v835_v59 = vunpack.c.l.b16 %v808_v52  ;;  %v760_v60 = vadd.f32 %v759_v53, %v758_v47  ;;  %v776_v37 = vrot.slane %v775_v33, 4 }
 0x517   :  { %v753_v39 = vadd.f32 %v752_v54, %v751_v48  ;;  %v772_v61 = vadd.f32 %v771_v55, %v770_v49  ;;  %v765_v36 = vadd.f32 %v764_v56, %v763_v13  ;;  %v784_v62 = vadd.f32 %v783_v57, %v782_v50 }
 0x518   :  { %v843_v63 = vsel %vm548_vm9, %v836_v58, %v835_v59  ;;  %v811_v38 = vpack.c.bf16 %v760_v60, %v760_v60  ;;  %v777_v0 = vadd.f32 %v776_v37, %v775_v33  ;;  %1098 = vmatpush3.bf16.msra.mxu1 %v1120_v35 }
 0x519   :  { %v810_v1 = vpack.c.bf16 %v753_v39, %v753_v39  ;;  %v773_v2 = vrot.slane %v772_v61, 1  ;;  %v766_v3 = vrot.slane %v765_v36, 1  ;;  %v785_v4 = vrot.slane %v784_v62, 2 }
 0x51a   :  { %v838_v5 = vunpack.c.l.b16 %v811_v38  ;;  %v778_v43 = vrot.slane %v777_v0, 2  ;;  %v798_v6 = vsel %vm550_vm10, %v753_v39, %v797_v51 }
 0x51b   :  { %v837_v45 = vunpack.c.l.b16 %v810_v1  ;;  %v774_v7 = vadd.f32 %v773_v2, %v772_v61  ;;  %v767_v8 = vadd.f32 %v766_v3, %v765_v36  ;;  %v786_v9 = vadd.f32 %v785_v4, %v784_v62 }
 0x51c   :  { %v779_v10 = vadd.f32 %v778_v43, %v777_v0  ;;  %v799_v14 = vsel %vm552_vm11, %v760_v60, %v798_v6 }
 0x51d   :  { %v844_v15 = vsel %vm550_vm10, %v837_v45, %v843_v63  ;;  %v813_v16 = vpack.c.bf16 %v774_v7, %v774_v7  ;;  %v812_v17 = vpack.c.bf16 %v767_v8, %v767_v8  ;;  %806 = vst.msk [vmem:[#allocation3] sm:$0xf] %vm805_vm6, %v799_v14  ;;  %v787_v19 = vrot.slane %v786_v9, 1 }
 0x51e   :  { %v845_v18 = vsel %vm552_vm11, %v838_v5, %v844_v15  ;;  %v780_v42 = vrot.slane %v779_v10, 1  ;;  %v800_v24 = vsel %vm548_vm9, %v774_v7, %v767_v8 }
 0x51f   :  { %v839_v20 = vunpack.c.l.b16 %v812_v17  ;;  %v788_v21 = vadd.f32 %v787_v19, %v786_v9  ;;  %v840_v23 = vunpack.c.l.b16 %v813_v16 }
 0x520   :  { %v781_v22 = vadd.f32 %v780_v42, %v779_v10 }
 0x521   :  { %v846_v44 = vsel %vm554_vm12, %v839_v20, %v845_v18  ;;  %v815_v25 = vpack.c.bf16 %v788_v21, %v788_v21 }
 0x522   :  { %v814_v26 = vpack.c.bf16 %v781_v22, %v781_v22  ;;  %v801_v27 = vsel %vm550_vm10, %v781_v22, %v800_v24  ;;  %v847_v41 = vsel %vm556_vm13, %v840_v23, %v846_v44 }
 0x523   :  { %v802_v28 = vsel %vm552_vm11, %v788_v21, %v801_v27  ;;  %v842_v29 = vunpack.c.l.b16 %v815_v25 }
 0x524   :  { %v841_v30 = vunpack.c.l.b16 %v814_v26  ;;  %807 = vst.msk [vmem:[#allocation3 + $0x4] sm:$0xf] %vm805_vm6, %v802_v28 }
 0x526   :  { %v848_v46 = vsel %vm558_vm14, %v841_v30, %v847_v41 }
 0x527   :  { %v849_v31 = vsel %vm560_vm15, %v842_v29, %v848_v46 }
 0x528   :  { %v850_v32 = vpack.c.b16 %v849_v31, %v849_v31 }
 0x52a   :  { %1092 = vmatmul.mubr.msk.bf16.vlgmr.msra.gmra.mxu0 %vm121_vm4, %v850_v32 }
 0x5ea   :  { %v900_v47 = vpop.f32.mrf.mxu0 }
 0x5eb   :  { %v901_v48 = vadd.f32 %v1029_v40, %v900_v47 }
 0x5ec   :  { %v1093_v49 = vpop.f32.mrf.mxu0 }
 0x5ed   :  { %1145 = vtanh.f32 %v901_v48 }
 0x5ee   :  { %v903_v13 = vpop.f32.mrf.mxu0 }
 0x5f0   :  { %v1094_v50 = vpop.f32.mrf.mxu0 }
 0x5fa   :  { %v1146_v33 = vpop.eup %1145 }
 0x5fb   :  { %v907_v12 = vpack.c.bf16 %v1146_v33, %v1146_v33 }
 0x5fd   :  { %1100 = vmatmul.mubr.msk.bf16.vlgmr.msra.gmra.mxu1 %vm121_vm4, %v907_v12 }
 0x5fe   :  { %1158 = shalt.err (!%p1155_p4)
}
 0x5ff   :  { %s1175_s8 = smov 64   ;;  %s1176_s9 = smov 4   ;;  %v1033_v11 = vld [vmem:[%s1486_s10] ss:$0 sm:$0xff] }
 0x600   :  { %990 = dma.vmem_to_hbm [thread:$0]  %s985_s21, 128, %s1487_s11, [#allocation4], %s1175_s8, %s1175_s8, %s1176_s9  }
 0x6bd   :  { %v968_v51 = vpop.f32.mrf.mxu1 }
 0x6be   :  { %v969_v52 = vadd.f32 %v1033_v11, %v968_v51 }
 0x6bf   :  { %v1101_v53 = vpop.f32.mrf.mxu1 }
 0x6c0   :  { %v975_v54 = vcombine.high %v969_v52, %v969_v52  ;;  %977 = vst [vmem:[%s1488_s12] sm:$0xf] %v969_v52 }
 0x6c1   :  { %v971_v55 = vpop.f32.mrf.mxu1 }
 0x6c2   :  { %978 = vst [vmem:[%s1488_s12 + $0x4] sm:$0xf] %v975_v54 }
 0x6c3   :  { %v1102_v56 = vpop.f32.mrf.mxu1 }
 0x6c4   :  { %1167 = dma.done.wait [#allocation4], 128  }
 0x6c5   :  { %1168 = vsyncadd [#allocation4], 4294967168 }
 0x6c6   :  { %998 = vsyncpa [#allocation4], 1 }

</bundles_post_ra>
